<compile_context>
chip_gen: v5e
topology: v5e:2x2
jax: 0.10.0
libtpu: 0.0.40
codegen_flags: <defaults>
</compile_context>

<pallas_src>
import jax
import jax.numpy as jnp
from jax import lax
from jax.experimental import pallas as pl
from jax.experimental.pallas import tpu as pltpu

LRELU_ALPHA = 0.2     # leaky-relu slope inside the GAT attention (alpha=0.2)
NEG_BIG = -9e15       # mask fill value used by the reference implementation
N_REL = 6             # number of relation types in NodeLayer1


def _round_up(v, m):
    return (v + m - 1) // m * m


def _elu(x):
    # exp(min(x, 0)) avoids spurious inf on the not-selected branch of the where.
    return jnp.where(x > 0, x, jnp.exp(jnp.minimum(x, 0.0)) - 1.0)


def _leaky_relu(x):
    return jnp.where(x > 0, x, LRELU_ALPHA * x)


def _gat_layer(h, mask, W, a_l_row, a_r_row):
    """One GraphAttentionLayer (concat=True -> ELU applied at the end).

    h: (Np, Fin_p) bf16, W: (Fin_p, Hp) bf16, a_*_row: (1, Hp) f32, mask: (Np, Np) bool.
    Returns (Np, Hp) f32.
    """
    # Linear transform: bf16 operands, f32 accumulation (MXU).
    Wh = jnp.dot(h, W, preferred_element_type=jnp.float32)                # (Np, Hp)

    # Attention projections. a_l is a lane-dense row, so wh1 is a VPU multiply +
    # XLU lane-reduce instead of a 1-column MXU matmul with a masked skinny operand.
    wh1 = jnp.sum(Wh * a_l_row, axis=-1, keepdims=True)                   # (Np, 1)
    # (1, Np) row of Wh @ a_r via one skinny MXU matmul with lane-dense operands
    # and a lane-dense result.
    wh2 = lax.dot_general(a_r_row, Wh,
                          dimension_numbers=(((1,), (1,)), ((), ())),
                          preferred_element_type=jnp.float32)             # (1, Np)

    e = _leaky_relu(wh1 + wh2)                                            # (Np, Np)

    # Mask non-edges and row-softmax (matches F.softmax(dim=1) with -9e15 fill).
    att = jnp.where(mask, e, NEG_BIG)
    att = att - jnp.max(att, axis=-1, keepdims=True)
    p = jnp.exp(att)                                                      # EUP
    inv_denom = pl.reciprocal(jnp.sum(p, axis=-1, keepdims=True), approx=True)
    att = p * inv_denom

    # Neighborhood aggregation: bf16 operands, f32 accumulation (MXU).
    h_prime = jnp.dot(att.astype(jnp.bfloat16), Wh.astype(jnp.bfloat16),
                      preferred_element_type=jnp.float32)                 # (Np, Hp)
    return _elu(h_prime)  # concat=True -> ELU inside the GAT layer


def node_layer1_kernel(x_ref, adj_ref, w1_ref, a1l_ref, a1r_ref,
                       w2_ref, a2l_ref, a2r_ref, o_ref):
    """One grid step = one relation type's HeteroLayer (two fused GAT layers)."""
    # adj>0 mask computed once and reused by both GAT layers of this relation.
    mask = adj_ref[...] > 0                                               # (Np, Np) bool

    # gc1 (ELU inside the GAT, concat=True) followed by HeteroLayer's own ELU.
    h1 = _gat_layer(x_ref[...], mask, w1_ref[...], a1l_ref[...], a1r_ref[...])
    h1 = _elu(h1)
    # TODO(synk): training-mode dropout (feature + attention dropout) not implemented;
    # this kernel reproduces eval()/inference semantics where F.dropout is identity.

    # gc2 + HeteroLayer ELU. h1 stays resident in VMEM/vregs (no HBM round trip).
    h2 = _gat_layer(h1.astype(jnp.bfloat16), mask,
                    w2_ref[...], a2l_ref[...], a2r_ref[...])
    o_ref[...] = _elu(h2).astype(o_ref.dtype)


def node_layer1(x, adj, params):
    """x: (1, N, nfeat) f32, adj: (1, 6, N, N) {0,1} f32 -> (1, N, 6*nout) f32."""
    assert x.ndim == 3 and x.shape[0] == 1
    assert adj.ndim == 4 and adj.shape[0] == 1 and adj.shape[1] == N_REL
    x2 = x[0]                          # batch of 1, matching the torch .squeeze()
    adj3 = adj[0]                      # (R, N, N)
    R, N, _ = adj3.shape
    nfeat = x2.shape[1]
    nout = params["W1"].shape[-1]

    Np = _round_up(N, 8)               # sublane-aligned node count
    Fp = _round_up(nfeat, 128)         # lane-dense input features
    Hp = _round_up(nout, 128)          # lane-dense hidden / output features

    # Padded, lane-dense operands. Zero padding keeps the math exact: padded adj
    # entries are 0 -> -9e15 mask -> exp underflows to exactly 0 in the softmax.
    xp = jnp.pad(x2, ((0, Np - N), (0, Fp - nfeat))).astype(jnp.bfloat16)
    adjp = jnp.pad(adj3, ((0, 0), (0, Np - N), (0, Np - N))).astype(jnp.bfloat16)
    w1p = jnp.pad(params["W1"], ((0, 0), (0, Fp - nfeat), (0, Hp - nout))).astype(jnp.bfloat16)
    w2p = jnp.pad(params["W2"], ((0, 0), (0, Hp - nout), (0, Hp - nout))).astype(jnp.bfloat16)

    def _a_rows(a):                    # (R, 2*nout, 1) -> left/right (R, 1, Hp) f32 rows
        al = jnp.pad(a[:, :nout, 0], ((0, 0), (0, Hp - nout)))[:, None, :]
        ar = jnp.pad(a[:, nout:, 0], ((0, 0), (0, Hp - nout)))[:, None, :]
        return al.astype(jnp.float32), ar.astype(jnp.float32)

    a1l, a1r = _a_rows(params["a1"])
    a2l, a2r = _a_rows(params["a2"])

    out = pl.pallas_call(
        node_layer1_kernel,
        out_shape=jax.ShapeDtypeStruct((R, Np, Hp), jnp.float32),
        grid=(R,),
        in_specs=[
            pl.BlockSpec((Np, Fp), lambda r: (0, 0)),           # x (shared by all relations)
            pl.BlockSpec((None, Np, Np), lambda r: (r, 0, 0)),  # adj[r] (bf16, streamed)
            pl.BlockSpec((None, Fp, Hp), lambda r: (r, 0, 0)),  # W1[r]
            pl.BlockSpec((None, 1, Hp), lambda r: (r, 0, 0)),   # a1_l[r]
            pl.BlockSpec((None, 1, Hp), lambda r: (r, 0, 0)),   # a1_r[r]
            pl.BlockSpec((None, Hp, Hp), lambda r: (r, 0, 0)),  # W2[r]
            pl.BlockSpec((None, 1, Hp), lambda r: (r, 0, 0)),   # a2_l[r]
            pl.BlockSpec((None, 1, Hp), lambda r: (r, 0, 0)),   # a2_r[r]
        ],
        out_specs=pl.BlockSpec((None, Np, Hp), lambda r: (r, 0, 0)),
        compiler_params=pltpu.CompilerParams(
            dimension_semantics=("parallel",),    # relations split across TCs on v7x
            vmem_limit_bytes=32 * 1024 * 1024,
        ),
    )(xp, adjp, w1p, a1l, a1r, w2p, a2l, a2r)

    # Un-pad and concatenate the 6 relation outputs along the feature dim (cat dim=2).
    out = out[:, :N, :nout]                                    # (R, N, nout)
    out = jnp.transpose(out, (1, 0, 2)).reshape(N, R * nout)   # (N, R*nout)
    return out[None]                                           # (1, N, R*nout)


def _xavier_uniform(key, shape, gain=1.414):
    fan_in, fan_out = shape[-2], shape[-1]
    bound = gain * (6.0 / (fan_in + fan_out)) ** 0.5
    return jax.random.uniform(key, shape, jnp.float32, -bound, bound)


def init_params(key, nfeat, nout, n_rel=N_REL):
    ks = jax.random.split(key, 4 * n_rel)
    W1, a1, W2, a2 = [], [], [], []
    for r in range(n_rel):
        W1.append(_xavier_uniform(ks[4 * r + 0], (nfeat, nout)))
        a1.append(_xavier_uniform(ks[4 * r + 1], (2 * nout, 1)))
        W2.append(_xavier_uniform(ks[4 * r + 2], (nout, nout)))
        a2.append(_xavier_uniform(ks[4 * r + 3], (2 * nout, 1)))
    return {"W1": jnp.stack(W1), "a1": jnp.stack(a1),
            "W2": jnp.stack(W2), "a2": jnp.stack(a2)}


if __name__ == "__main__":
    N, nfeat, nout = 16, 32, 32
    key = jax.random.PRNGKey(0)
    kx, kadj, kp = jax.random.split(key, 3)

    x = jax.random.normal(kx, (1, N, nfeat), jnp.float32)
    # Random 0/1 adjacency per relation type, with self-loops so every real row has
    # at least one edge (matches typical GAT preprocessing).
    adj = (jax.random.uniform(kadj, (1, N_REL, N, N)) > 0.5).astype(jnp.float32)
    adj = jnp.maximum(adj, jnp.eye(N, dtype=jnp.float32)[None, None])

    params = init_params(kp, nfeat, nout)

    out = node_layer1(x, adj, params)
    out = jax.block_until_ready(out)
    assert out.shape == (1, N, N_REL * nout)
    assert bool(jnp.all(jnp.isfinite(out)))
    print("KERNEL_OK")
</pallas_src>

<mosaic_0001>
module attributes {stable_mosaic.version = 11 : i64} {
  func.func @node_layer1_kernel(%arg0: i32, %arg1: memref<16x128xbf16, #tpu.memory_space<vmem>>, %arg2: memref<1x16x16xbf16, #tpu.memory_space<vmem>>, %arg3: memref<1x128x128xbf16, #tpu.memory_space<vmem>>, %arg4: memref<1x1x128xf32, #tpu.memory_space<vmem>>, %arg5: memref<1x1x128xf32, #tpu.memory_space<vmem>>, %arg6: memref<1x128x128xbf16, #tpu.memory_space<vmem>>, %arg7: memref<1x1x128xf32, #tpu.memory_space<vmem>>, %arg8: memref<1x1x128xf32, #tpu.memory_space<vmem>>, %arg9: memref<1x16x128xf32, #tpu.memory_space<vmem>>) attributes {dimension_semantics = [#tpu.dimension_semantics<parallel>], iteration_bounds = array<i64: 6>, scalar_prefetch = 0 : i64, scratch_operands = 0 : i64, tpu.core_type = #tpu.core_type<tc>, window_params = [{pipeline_mode = #tpu.pipeline_mode<synchronous>, transform_indices = @transform_0, window_bounds = array<i64: 16, 128>}, {transform_indices = @transform_1, window_bounds = array<i64: 1, 16, 16>}, {transform_indices = @transform_2, window_bounds = array<i64: 1, 128, 128>}, {transform_indices = @transform_3, window_bounds = array<i64: 1, 1, 128>}, {transform_indices = @transform_4, window_bounds = array<i64: 1, 1, 128>}, {transform_indices = @transform_5, window_bounds = array<i64: 1, 128, 128>}, {transform_indices = @transform_6, window_bounds = array<i64: 1, 1, 128>}, {transform_indices = @transform_7, window_bounds = array<i64: 1, 1, 128>}, {transform_indices = @transform_8, window_bounds = array<i64: 1, 16, 128>}]} {
    %c0 = arith.constant 0 : index
    %c0_0 = arith.constant 0 : index
    %c0_1 = arith.constant 0 : index
    %0 = vector.load %arg2[%c0, %c0_0, %c0_1] : memref<1x16x16xbf16, #tpu.memory_space<vmem>>, vector<1x16x16xbf16>
    %1 = vector.shape_cast %0 : vector<1x16x16xbf16> to vector<16x16xbf16>
    %cst = arith.constant 0.000000e+00 : bf16
    %2 = vector.broadcast %cst : bf16 to vector<16x16xbf16>
    %3 = arith.cmpf ogt, %1, %2 : vector<16x16xbf16>
    %c0_2 = arith.constant 0 : index
    %c0_3 = arith.constant 0 : index
    %4 = vector.load %arg1[%c0_2, %c0_3] : memref<16x128xbf16, #tpu.memory_space<vmem>>, vector<16x128xbf16>
    %c0_4 = arith.constant 0 : index
    %c0_5 = arith.constant 0 : index
    %c0_6 = arith.constant 0 : index
    %5 = vector.load %arg3[%c0_4, %c0_5, %c0_6] : memref<1x128x128xbf16, #tpu.memory_space<vmem>>, vector<1x128x128xbf16>
    %6 = vector.shape_cast %5 : vector<1x128x128xbf16> to vector<128x128xbf16>
    %c0_7 = arith.constant 0 : index
    %c0_8 = arith.constant 0 : index
    %c0_9 = arith.constant 0 : index
    %7 = vector.load %arg4[%c0_7, %c0_8, %c0_9] : memref<1x1x128xf32, #tpu.memory_space<vmem>>, vector<1x1x128xf32>
    %8 = vector.shape_cast %7 : vector<1x1x128xf32> to vector<1x128xf32>
    %c0_10 = arith.constant 0 : index
    %c0_11 = arith.constant 0 : index
    %c0_12 = arith.constant 0 : index
    %9 = vector.load %arg5[%c0_10, %c0_11, %c0_12] : memref<1x1x128xf32, #tpu.memory_space<vmem>>, vector<1x1x128xf32>
    %10 = vector.shape_cast %9 : vector<1x1x128xf32> to vector<1x128xf32>
    %cst_13 = arith.constant dense<0.000000e+00> : vector<16x128xf32>
    %11 = tpu.matmul %4, %6, %cst_13 {dimension_numbers = #tpu.dot_dimension_numbers<[1], [0], [0], [1], [0, 0, 1, 1], [], []>} : vector<16x128xbf16>, vector<128x128xbf16>, vector<16x128xf32> -> vector<16x128xf32>
    %12 = vector.broadcast %8 : vector<1x128xf32> to vector<16x128xf32>
    %13 = arith.mulf %11, %12 : vector<16x128xf32>
    %cst_14 = arith.constant dense<0.000000e+00> : vector<16xf32>
    %14 = vector.multi_reduction <add>, %13, %cst_14 [1] : vector<16x128xf32> to vector<16xf32>
    %15 = vector.shape_cast %14 : vector<16xf32> to vector<16x1xf32>
    %cst_15 = arith.constant dense<0.000000e+00> : vector<1x16xf32>
    %16 = tpu.matmul %10, %11, %cst_15 {dimension_numbers = #tpu.dot_dimension_numbers<[1], [1], [0], [0], [0, 0, 1, 0], [], []>} : vector<1x128xf32>, vector<16x128xf32>, vector<1x16xf32> -> vector<1x16xf32>
    %17 = vector.broadcast %15 : vector<16x1xf32> to vector<16x16xf32>
    %18 = vector.broadcast %16 : vector<1x16xf32> to vector<16x16xf32>
    %19 = arith.addf %17, %18 : vector<16x16xf32>
    %cst_16 = arith.constant 0.000000e+00 : f32
    %20 = vector.broadcast %cst_16 : f32 to vector<16x16xf32>
    %21 = arith.cmpf ogt, %19, %20 : vector<16x16xf32>
    %cst_17 = arith.constant 2.000000e-01 : f32
    %22 = vector.broadcast %cst_17 : f32 to vector<16x16xf32>
    %23 = arith.mulf %22, %19 : vector<16x16xf32>
    %24 = arith.select %21, %19, %23 : vector<16x16xi1>, vector<16x16xf32>
    %cst_18 = arith.constant -9.000000e+15 : f32
    %25 = vector.broadcast %cst_18 : f32 to vector<16x16xf32>
    %26 = arith.select %3, %24, %25 : vector<16x16xi1>, vector<16x16xf32>
    %cst_19 = arith.constant dense<0xFF800000> : vector<16xf32>
    %27 = vector.multi_reduction <maximumf>, %26, %cst_19 [1] : vector<16x16xf32> to vector<16xf32>
    %28 = vector.shape_cast %27 : vector<16xf32> to vector<16x1xf32>
    %29 = vector.broadcast %28 : vector<16x1xf32> to vector<16x16xf32>
    %30 = arith.subf %26, %29 : vector<16x16xf32>
    %31 = math.exp %30 : vector<16x16xf32>
    %cst_20 = arith.constant dense<0.000000e+00> : vector<16xf32>
    %32 = vector.multi_reduction <add>, %31, %cst_20 [1] : vector<16x16xf32> to vector<16xf32>
    %33 = vector.shape_cast %32 : vector<16xf32> to vector<16x1xf32>
    %34 = tpu.reciprocal %33 {approx = true} : vector<16x1xf32> -> vector<16x1xf32>
    %35 = vector.broadcast %34 : vector<16x1xf32> to vector<16x16xf32>
    %36 = arith.mulf %31, %35 : vector<16x16xf32>
    %37 = arith.truncf %36 : vector<16x16xf32> to vector<16x16xbf16>
    %38 = arith.truncf %11 : vector<16x128xf32> to vector<16x128xbf16>
    %cst_21 = arith.constant dense<0.000000e+00> : vector<16x128xf32>
    %39 = tpu.matmul %37, %38, %cst_21 {dimension_numbers = #tpu.dot_dimension_numbers<[1], [0], [0], [1], [0, 0, 1, 1], [], []>} : vector<16x16xbf16>, vector<16x128xbf16>, vector<16x128xf32> -> vector<16x128xf32>
    %cst_22 = arith.constant 0.000000e+00 : f32
    %40 = vector.broadcast %cst_22 : f32 to vector<16x128xf32>
    %41 = arith.cmpf ogt, %39, %40 : vector<16x128xf32>
    %cst_23 = arith.constant 0.000000e+00 : f32
    %42 = vector.broadcast %cst_23 : f32 to vector<16x128xf32>
    %43 = arith.minimumf %39, %42 : vector<16x128xf32>
    %44 = math.exp %43 : vector<16x128xf32>
    %cst_24 = arith.constant 1.000000e+00 : f32
    %45 = vector.broadcast %cst_24 : f32 to vector<16x128xf32>
    %46 = arith.subf %44, %45 : vector<16x128xf32>
    %47 = arith.select %41, %39, %46 : vector<16x128xi1>, vector<16x128xf32>
    %cst_25 = arith.constant 0.000000e+00 : f32
    %48 = vector.broadcast %cst_25 : f32 to vector<16x128xf32>
    %49 = arith.cmpf ogt, %47, %48 : vector<16x128xf32>
    %cst_26 = arith.constant 0.000000e+00 : f32
    %50 = vector.broadcast %cst_26 : f32 to vector<16x128xf32>
    %51 = arith.minimumf %47, %50 : vector<16x128xf32>
    %52 = math.exp %51 : vector<16x128xf32>
    %cst_27 = arith.constant 1.000000e+00 : f32
    %53 = vector.broadcast %cst_27 : f32 to vector<16x128xf32>
    %54 = arith.subf %52, %53 : vector<16x128xf32>
    %55 = arith.select %49, %47, %54 : vector<16x128xi1>, vector<16x128xf32>
    %56 = arith.truncf %55 : vector<16x128xf32> to vector<16x128xbf16>
    %c0_28 = arith.constant 0 : index
    %c0_29 = arith.constant 0 : index
    %c0_30 = arith.constant 0 : index
    %57 = vector.load %arg6[%c0_28, %c0_29, %c0_30] : memref<1x128x128xbf16, #tpu.memory_space<vmem>>, vector<1x128x128xbf16>
    %58 = vector.shape_cast %57 : vector<1x128x128xbf16> to vector<128x128xbf16>
    %c0_31 = arith.constant 0 : index
    %c0_32 = arith.constant 0 : index
    %c0_33 = arith.constant 0 : index
    %59 = vector.load %arg7[%c0_31, %c0_32, %c0_33] : memref<1x1x128xf32, #tpu.memory_space<vmem>>, vector<1x1x128xf32>
    %60 = vector.shape_cast %59 : vector<1x1x128xf32> to vector<1x128xf32>
    %c0_34 = arith.constant 0 : index
    %c0_35 = arith.constant 0 : index
    %c0_36 = arith.constant 0 : index
    %61 = vector.load %arg8[%c0_34, %c0_35, %c0_36] : memref<1x1x128xf32, #tpu.memory_space<vmem>>, vector<1x1x128xf32>
    %62 = vector.shape_cast %61 : vector<1x1x128xf32> to vector<1x128xf32>
    %cst_37 = arith.constant dense<0.000000e+00> : vector<16x128xf32>
    %63 = tpu.matmul %56, %58, %cst_37 {dimension_numbers = #tpu.dot_dimension_numbers<[1], [0], [0], [1], [0, 0, 1, 1], [], []>} : vector<16x128xbf16>, vector<128x128xbf16>, vector<16x128xf32> -> vector<16x128xf32>
    %64 = vector.broadcast %60 : vector<1x128xf32> to vector<16x128xf32>
    %65 = arith.mulf %63, %64 : vector<16x128xf32>
    %cst_38 = arith.constant dense<0.000000e+00> : vector<16xf32>
    %66 = vector.multi_reduction <add>, %65, %cst_38 [1] : vector<16x128xf32> to vector<16xf32>
    %67 = vector.shape_cast %66 : vector<16xf32> to vector<16x1xf32>
    %cst_39 = arith.constant dense<0.000000e+00> : vector<1x16xf32>
    %68 = tpu.matmul %62, %63, %cst_39 {dimension_numbers = #tpu.dot_dimension_numbers<[1], [1], [0], [0], [0, 0, 1, 0], [], []>} : vector<1x128xf32>, vector<16x128xf32>, vector<1x16xf32> -> vector<1x16xf32>
    %69 = vector.broadcast %67 : vector<16x1xf32> to vector<16x16xf32>
    %70 = vector.broadcast %68 : vector<1x16xf32> to vector<16x16xf32>
    %71 = arith.addf %69, %70 : vector<16x16xf32>
    %cst_40 = arith.constant 0.000000e+00 : f32
    %72 = vector.broadcast %cst_40 : f32 to vector<16x16xf32>
    %73 = arith.cmpf ogt, %71, %72 : vector<16x16xf32>
    %cst_41 = arith.constant 2.000000e-01 : f32
    %74 = vector.broadcast %cst_41 : f32 to vector<16x16xf32>
    %75 = arith.mulf %74, %71 : vector<16x16xf32>
    %76 = arith.select %73, %71, %75 : vector<16x16xi1>, vector<16x16xf32>
    %cst_42 = arith.constant -9.000000e+15 : f32
    %77 = vector.broadcast %cst_42 : f32 to vector<16x16xf32>
    %78 = arith.select %3, %76, %77 : vector<16x16xi1>, vector<16x16xf32>
    %cst_43 = arith.constant dense<0xFF800000> : vector<16xf32>
    %79 = vector.multi_reduction <maximumf>, %78, %cst_43 [1] : vector<16x16xf32> to vector<16xf32>
    %80 = vector.shape_cast %79 : vector<16xf32> to vector<16x1xf32>
    %81 = vector.broadcast %80 : vector<16x1xf32> to vector<16x16xf32>
    %82 = arith.subf %78, %81 : vector<16x16xf32>
    %83 = math.exp %82 : vector<16x16xf32>
    %cst_44 = arith.constant dense<0.000000e+00> : vector<16xf32>
    %84 = vector.multi_reduction <add>, %83, %cst_44 [1] : vector<16x16xf32> to vector<16xf32>
    %85 = vector.shape_cast %84 : vector<16xf32> to vector<16x1xf32>
    %86 = tpu.reciprocal %85 {approx = true} : vector<16x1xf32> -> vector<16x1xf32>
    %87 = vector.broadcast %86 : vector<16x1xf32> to vector<16x16xf32>
    %88 = arith.mulf %83, %87 : vector<16x16xf32>
    %89 = arith.truncf %88 : vector<16x16xf32> to vector<16x16xbf16>
    %90 = arith.truncf %63 : vector<16x128xf32> to vector<16x128xbf16>
    %cst_45 = arith.constant dense<0.000000e+00> : vector<16x128xf32>
    %91 = tpu.matmul %89, %90, %cst_45 {dimension_numbers = #tpu.dot_dimension_numbers<[1], [0], [0], [1], [0, 0, 1, 1], [], []>} : vector<16x16xbf16>, vector<16x128xbf16>, vector<16x128xf32> -> vector<16x128xf32>
    %cst_46 = arith.constant 0.000000e+00 : f32
    %92 = vector.broadcast %cst_46 : f32 to vector<16x128xf32>
    %93 = arith.cmpf ogt, %91, %92 : vector<16x128xf32>
    %cst_47 = arith.constant 0.000000e+00 : f32
    %94 = vector.broadcast %cst_47 : f32 to vector<16x128xf32>
    %95 = arith.minimumf %91, %94 : vector<16x128xf32>
    %96 = math.exp %95 : vector<16x128xf32>
    %cst_48 = arith.constant 1.000000e+00 : f32
    %97 = vector.broadcast %cst_48 : f32 to vector<16x128xf32>
    %98 = arith.subf %96, %97 : vector<16x128xf32>
    %99 = arith.select %93, %91, %98 : vector<16x128xi1>, vector<16x128xf32>
    %cst_49 = arith.constant 0.000000e+00 : f32
    %100 = vector.broadcast %cst_49 : f32 to vector<16x128xf32>
    %101 = arith.cmpf ogt, %99, %100 : vector<16x128xf32>
    %cst_50 = arith.constant 0.000000e+00 : f32
    %102 = vector.broadcast %cst_50 : f32 to vector<16x128xf32>
    %103 = arith.minimumf %99, %102 : vector<16x128xf32>
    %104 = math.exp %103 : vector<16x128xf32>
    %cst_51 = arith.constant 1.000000e+00 : f32
    %105 = vector.broadcast %cst_51 : f32 to vector<16x128xf32>
    %106 = arith.subf %104, %105 : vector<16x128xf32>
    %107 = arith.select %101, %99, %106 : vector<16x128xi1>, vector<16x128xf32>
    %c0_52 = arith.constant 0 : index
    %c0_53 = arith.constant 0 : index
    %c0_54 = arith.constant 0 : index
    %108 = vector.load %arg9[%c0_52, %c0_53, %c0_54] : memref<1x16x128xf32, #tpu.memory_space<vmem>>, vector<1x16x128xf32>
    %109 = vector.shape_cast %108 : vector<1x16x128xf32> to vector<16x128xf32>
    %110 = vector.shape_cast %107 : vector<16x128xf32> to vector<1x16x128xf32>
    tpu.vector_store %arg9[%c0_52, %c0_53, %c0_54], %110 {strides = array<i32>} : memref<1x16x128xf32, #tpu.memory_space<vmem>>, vector<1x16x128xf32>,
    return
  }
  func.func @transform_0(%arg0: i32) -> (i32, i32) {
    %c0_i32 = arith.constant 0 : i32
    %c0_i32_0 = arith.constant 0 : i32
    %c0_i32_1 = arith.constant 0 : i32
    return %c0_i32, %c0_i32_0 : i32, i32
  }
  func.func @transform_1(%arg0: i32) -> (i32, i32, i32) {
    %c0_i32 = arith.constant 0 : i32
    %c0_i32_0 = arith.constant 0 : i32
    %c0_i32_1 = arith.constant 0 : i32
    return %arg0, %c0_i32, %c0_i32_0 : i32, i32, i32
  }
  func.func @transform_2(%arg0: i32) -> (i32, i32, i32) {
    %c0_i32 = arith.constant 0 : i32
    %c0_i32_0 = arith.constant 0 : i32
    %c0_i32_1 = arith.constant 0 : i32
    return %arg0, %c0_i32, %c0_i32_0 : i32, i32, i32
  }
  func.func @transform_3(%arg0: i32) -> (i32, i32, i32) {
    %c0_i32 = arith.constant 0 : i32
    %c0_i32_0 = arith.constant 0 : i32
    %c0_i32_1 = arith.constant 0 : i32
    return %arg0, %c0_i32, %c0_i32_0 : i32, i32, i32
  }
  func.func @transform_4(%arg0: i32) -> (i32, i32, i32) {
    %c0_i32 = arith.constant 0 : i32
    %c0_i32_0 = arith.constant 0 : i32
    %c0_i32_1 = arith.constant 0 : i32
    return %arg0, %c0_i32, %c0_i32_0 : i32, i32, i32
  }
  func.func @transform_5(%arg0: i32) -> (i32, i32, i32) {
    %c0_i32 = arith.constant 0 : i32
    %c0_i32_0 = arith.constant 0 : i32
    %c0_i32_1 = arith.constant 0 : i32
    return %arg0, %c0_i32, %c0_i32_0 : i32, i32, i32
  }
  func.func @transform_6(%arg0: i32) -> (i32, i32, i32) {
    %c0_i32 = arith.constant 0 : i32
    %c0_i32_0 = arith.constant 0 : i32
    %c0_i32_1 = arith.constant 0 : i32
    return %arg0, %c0_i32, %c0_i32_0 : i32, i32, i32
  }
  func.func @transform_7(%arg0: i32) -> (i32, i32, i32) {
    %c0_i32 = arith.constant 0 : i32
    %c0_i32_0 = arith.constant 0 : i32
    %c0_i32_1 = arith.constant 0 : i32
    return %arg0, %c0_i32, %c0_i32_0 : i32, i32, i32
  }
  func.func @transform_8(%arg0: i32) -> (i32, i32, i32) {
    %c0_i32 = arith.constant 0 : i32
    %c0_i32_0 = arith.constant 0 : i32
    %c0_i32_1 = arith.constant 0 : i32
    return %arg0, %c0_i32, %c0_i32_0 : i32, i32, i32
  }
}

</mosaic_0001>

<bundles_post_ra>
// kernel: tpu_custom_call.1
= control target key start
LH: loop header
LB: loop body
LE: loop exit
PB: predicated region body
PF: predicated region fallthrough
CT: control target
= control target key end

     0   :  { %s2041_s0 = inlined_call_operand.hbm [shape: bf16[16,128], index: 0, kind: input, shape index: {}]   ;;  %s2042_s1 = inlined_call_operand.hbm [shape: bf16[6,16,16], index: 1, kind: input, shape index: {}]   ;;  %s2043_s2 = inlined_call_operand.hbm [shape: bf16[6,128,128], index: 2, kind: input, shape index: {}]   ;;  %s2044_s3 = inlined_call_operand.hbm [shape: f32[6,1,128], index: 3, kind: input, shape index: {}]   ;;  %s2045_s4 = inlined_call_operand.hbm [shape: f32[6,1,128], index: 4, kind: input, shape index: {}]   ;;  %s2046_s5 = inlined_call_operand.hbm [shape: bf16[6,128,128], index: 5, kind: input, shape index: {}]   ;;  %s2047_s6 = inlined_call_operand.hbm [shape: f32[6,1,128], index: 6, kind: input, shape index: {}]   ;;  %s2048_s7 = inlined_call_operand.vmem [shape: f32[6,1,128], index: 7, kind: input, shape index: {}]   ;;  %s2049_s8 = inlined_call_operand.hbm [shape: f32[6,16,128], index: 8, kind: output, shape index: {}]  }
   0x1   :  { %2061 = sst [smem:[#allocation22_spill]] %s2041_s0 }
   0x2   :  { %2062 = sst [smem:[#allocation23_spill]] %s2042_s1 }
   0x3   :  { %2063 = sst [smem:[#allocation24_spill]] %s2044_s3 }
   0x4   :  { %2064 = sst [smem:[#allocation25_spill]] %s2048_s7 }
   0x5   :  { %2065 = sst [smem:[#allocation26_spill]] %s2049_s8 }
   0x6   :  { %13 = vsyncpa [#allocation3], 0 }
   0x7   :  { %14 = vsyncpa [#allocation6], 0 }
   0x8   :  { %16 = vsyncpa [#allocation6 + $0x1], 0 }
   0x9   :  { %17 = vsyncpa [#allocation9], 0 }
   0xa   :  { %19 = vsyncpa [#allocation9 + $0x1], 0 }
   0xb   :  { %20 = vsyncpa [#allocation12], 0 }
   0xc   :  { %22 = vsyncpa [#allocation12 + $0x1], 0 }
   0xd   :  { %23 = vsyncpa [#allocation4], 0 }
   0xe   :  { %25 = vsyncpa [#allocation4 + $0x1], 0  ;;  %s1717_s27 = smov 0   ;;  %s1719_s28 = smov 0  }
   0xf   :  { %s1721_s29 = smov 0   ;;  %s1723_s30 = smov 0  }
  0x10 LB: > { %s1738_s9 = sadd.s32 1, %s1665_s30   ;;  %s59_s10 = sadd.s32 1, %s1661_s29  ;;  %s1665_s30 = sphi %s1723_s30, %s2091_s30   ;;  %s1661_s29 = sphi %s1721_s29, %s2095_s29   ;;  %s1657_s28 = sphi %s1719_s28, %s2094_s28   ;;  %s1653_s27 = sphi %s1717_s27, %s2093_s27  }
  0x11   : > { %2066 = sst [smem:[#allocation20_spill]] %s1738_s9  ;;  %s56_s11 = ssub.s32 %s1665_s30, %s1738_s9 }
  0x12   : > { %p66_p0 = scmp.ne.s32.totalorder %s1661_s29, %s1657_s28  ;;  %p57_p1 = scmp.eq.s32.totalorder %s56_s11, 0 }
  0x13   : > { %p67_p2 = scmp.eq.s32.totalorder %s1665_s30, 0  ;;  %p1303_p4 = scmp.lt.s32.totalorder %s1665_s30, 6 }
  0x14   : > { %s1747_s12 = scalar_select %p57_p1, %s1661_s29, %s59_s10  }
  0x15   : > { %p68_p3 = por %p67_p2, %p66_p0  ;;  %s1754_s13 = sand.u32 1, %s1665_s30  }
  0x16   : > { %2067 = sst [smem:[#allocation21_spill]] %s1747_s12  ;;  %s1757_s14 = sand.u32 1, %s1661_s29  }
  0x17   : > { %s1134_s15 = sshll.u32 %s1757_s14, 3  ;;  %s1232_s16 = sshll.u32 %s1665_s30, 3 }
  0x18   : > { %s2068_s1 = sld [smem:[#allocation23_spill]]  ;;  %s296_s21 = scalar_lea.vmem [#allocation5], %s1134_s15 }
  0x19   : > { %s304_s22 = sshll.u32 %s296_s21, 4  ;;  %p1764_p5 = pnand %p1303_p4, %p68_p3  ;;  %s305_s22 = int_to_ptr.vmem [resolvable:$true] %s304_s22 }
  0x1a   : > { %s2070_s3 = sld [smem:[#allocation24_spill]]  ;;  %s2053_s11 = scalar_lea.sflag [#allocation6], %s1754_s13 }
  0x1b   : > { %p1777_p7 = pneg %p1764_p5 }
  0x1e   : > { %s301_s19 = scalar_lea.hbm %s2068_s1, %s1232_s16 }
  0x1f   : > { %s302_s20 = sshll.u32 %s301_s19, 4  ;;  %s1384_s19 = scalar_lea.hbm %s2068_s1, 48  ;;  %s303_s20 = int_to_ptr.hbm [resolvable:$true] %s302_s20 }
  0x20   : > { %s342_s26 = scalar_lea.hbm %s2070_s3, %s1665_s30  ;;  %s1377_s12 = sshra.s32 %s303_s20, 4  ;;  %s1378_s12 = int_to_ptr.hbm [resolvable:$true] %s1377_s12 }
  0x21   : > { %s1772_s10 = sshll.u32 %s342_s26, 4  ;;  %s1379_s16 = scalar_lea.hbm %s1378_s12, 8  ;;  %s345_s10 = int_to_ptr.hbm [resolvable:$true] %s1772_s10 }
  0x22   : > { %p1380_p6 = scmp.ne.s32.totalorder %s1378_s12, %s1379_s16  ;;  %p1385_p10 = scmp.lt.s32.totalorder %s1378_s12, %s2068_s1 }
  0x23   : > { %p1386_p11 = scmp.lt.s32.totalorder %s1384_s19, %s1379_s16 }
  0x24   : > { %p1382_p8 = pnand %p1777_p7, %p1380_p6 }
  0x25   : > { %p1387_p12 = por %p1386_p11, %p1385_p10 }
  0x26   : > { %p1383_p9 = pneg %p1382_p8 }
  0x28   : > { %p1388_p13 = pnand %p1387_p12, %p1383_p9 }
  0x2a   : > { %1391 = shalt.err (!%p1388_p13)
}
  0x2b   : > { %s2054_s25 = smov 64   ;;  %s2057_s26 = smov 4  }
  0x2c   : > { %1282 = dma.hbm_to_vmem [thread:$0]  (!%p1764_p5), %s303_s20, 128, %s305_s22, %s2053_s11, %s2054_s25, %s2054_s25, %s2057_s26  }
  0x2d   : > { %s339_s12 = scalar_lea.vmem [#allocation8], %s1757_s14  ;;  %s1137_s17 = sshll.u32 %s1757_s14, 6 }
  0x2e   : > { %s346_s16 = sshll.u32 %s339_s12, 4  ;;  %s2056_s18 = scalar_lea.sflag [#allocation9], %s1754_s13  ;;  %s347_s16 = int_to_ptr.vmem [resolvable:$true] %s346_s16 }
  0x2f   : > { %s1407_s19 = sshra.s32 %s345_s10, 4  ;;  %s1414_s9 = scalar_lea.hbm %s2070_s3, 6  ;;  %s1408_s19 = int_to_ptr.hbm [resolvable:$true] %s1407_s19 }
  0x30   : > { %s1409_s21 = scalar_lea.hbm %s1408_s19, 1  ;;  %p1415_p4 = scmp.lt.s32.totalorder %s1408_s19, %s2070_s3 }
  0x31   : > { %p1410_p1 = scmp.ne.s32.totalorder %s1408_s19, %s1409_s21  ;;  %p1416_p6 = scmp.lt.s32.totalorder %s1414_s9, %s1409_s21 }
  0x33   : > { %p1412_p2 = pnand %p1410_p1, %p1777_p7  ;;  %p1417_p8 = por %p1416_p6, %p1415_p4 }
  0x35   : > { %p1413_p3 = pneg %p1412_p2 }
  0x37   : > { %p1418_p9 = pnand %p1417_p8, %p1413_p3 }
  0x39   : > { %1421 = shalt.err (!%p1418_p9)
}
  0x3a   : > { %1288 = dma.hbm_to_vmem [thread:$0]  (!%p1764_p5), %s345_s10, 16, %s347_s16, %s2056_s18  }
  0x3b   : > { %s1233_s20 = sshll.u32 %s1665_s30, 6  ;;  %s318_s24 = scalar_lea.vmem [#allocation7], %s1137_s17 }
  0x3c   : > { %s323_s1 = scalar_lea.hbm %s2043_s2, %s1233_s20  ;;  %s326_s7 = sshll.u32 %s318_s24, 4  ;;  %s1816_s7 = int_to_ptr.vmem [resolvable:$true] %s326_s7 }
  0x3d   : > { %s324_s8 = sshll.u32 %s323_s1, 4  ;;  %s379_s21 = scalar_lea.hbm %s2046_s5, %s1233_s20  ;;  %s1818_s8 = int_to_ptr.hbm [resolvable:$true] %s324_s8 }
  0x3e   : > { %s380_s11 = sshll.u32 %s379_s21, 4  ;;  %s374_s25 = scalar_lea.vmem [#allocation11], %s1137_s17  ;;  %s381_s11 = int_to_ptr.hbm [resolvable:$true] %s380_s11 }
  0x3f   : > { %s382_s10 = sshll.u32 %s374_s25, 4  ;;  %s2059_s16 = scalar_lea.sflag [#allocation12], %s1754_s13  ;;  %s383_s10 = int_to_ptr.vmem [resolvable:$true] %s382_s10 }
  0x40   : > { %s1437_s22 = sshra.s32 %s381_s11, 4  ;;  %s1444_s18 = scalar_lea.hbm %s2046_s5, 384  ;;  %s1438_s22 = int_to_ptr.hbm [resolvable:$true] %s1437_s22 }
  0x41   : > { %s1439_s12 = scalar_lea.hbm %s1438_s22, 64  ;;  %p1445_p13 = scmp.lt.s32.totalorder %s1438_s22, %s2046_s5 }
  0x42   : > { %p1440_p10 = scmp.ne.s32.totalorder %s1438_s22, %s1439_s12  ;;  %p1446_p1 = scmp.lt.s32.totalorder %s1444_s18, %s1439_s12 }
  0x44   : > { %p1442_p11 = pnand %p1440_p10, %p1777_p7  ;;  %p1447_p2 = por %p1446_p1, %p1445_p13 }
  0x46   : > { %p1443_p12 = pneg %p1442_p11 }
  0x48   : > { %p1448_p3 = pnand %p1447_p2, %p1443_p12 }
  0x4a   : > { %1451 = shalt.err (!%p1448_p3)
}
  0x4b   : > { %s2072_s25 = smov 4   ;;  %s2073_s17 = smov 64  }
  0x4c   : > { %1294 = dma.hbm_to_vmem [thread:$0]  (!%p1764_p5), %s381_s11, 1024, %s383_s10, %s2059_s16, %s2073_s17, %s2073_s17, %s2072_s25  }
  0x4d   : > { %s1840_s26 = sadd.s32 4294967295, %s1665_s30   ;;  %s1130_s18 = sadd.s32 4294967294, %s1665_s30  }
  0x4e   : > { %p72_p4 = scmp.ne.s32.totalorder %s1657_s28, %s1653_s27  ;;  %p2060_p6 = scmp.eq.s32.totalorder %s1840_s26, 0 }
  0x4f   : > { %p252_p8 = scmp.eq.s32.totalorder %s1840_s26, 5  ;;  %p258_p9 = scmp.eq.s32.totalorder %s1130_s18, 5 }
  0x50   : > { %p1849_p10 = por %p2060_p6, %p72_p4  ;;  %p1131_p11 = scmp.ge.s32.totalorder %s1665_s30, 1 }
  0x51   : > { %p1857_p12 = por %p252_p8, %p66_p0  ;;  %p1861_p13 = por %p258_p9, %p72_p4 }
  0x52   : > { %p265_p1 = scmp.lt.s32.totalorder %s1665_s30, 7  ;;  %s2077_s0 = sld [smem:[#allocation22_spill]] }
  0x53   : > { %s1669_s1 = smov [#allocation2]   ;;  %s1467_s9 = sshra.s32 %s1818_s8, 4  ;;  %s1468_s9 = int_to_ptr.hbm [resolvable:$true] %s1467_s9 }
  0x54   : > { %p1869_p2 = pnand %p1131_p11, %p265_p1  ;;  %s278_s24 = sshll.u32 %s1669_s1, 4  ;;  %s279_s24 = int_to_ptr.vmem [resolvable:$true] %s278_s24 }
  0x55   : > { %s1469_s18 = scalar_lea.hbm %s1468_s9, 64  ;;  %s1474_s16 = scalar_lea.hbm %s2043_s2, 384 }
  0x56   : > { %p1275_p0 = pneg %p1869_p2  ;;  %p1470_p3 = scmp.ne.s32.totalorder %s1468_s9, %s1469_s18 }
  0x57   : > { %p1475_p9 = scmp.lt.s32.totalorder %s1468_s9, %s2043_s2  ;;  %p1476_p11 = scmp.lt.s32.totalorder %s1474_s16, %s1469_s18 }
  0x58   : > { %s276_s22 = sshll.u32 %s2077_s0, 4  ;;  %p1472_p4 = pnand %p1470_p3, %p1777_p7  ;;  %s277_s22 = int_to_ptr.hbm [resolvable:$true] %s276_s22 }
  0x59   : > { %p1477_p1 = por %p1476_p11, %p1475_p9 }
  0x5a   : > { %p1473_p8 = pneg %p1472_p4 }
  0x5c   : > { %p1478_p6 = pnand %p1477_p1, %p1473_p8 }
  0x5e   : > { %1481 = shalt.err (!%p1478_p6)
}
  0x5f   : > { %s2079_s1 = scalar_lea.sflag [#allocation6], %s1754_s13  ;;  %p2080_p3 = scmp.eq.s32.totalorder %s1840_s26, 0 }
  0x60   : > { %1285 = dma.hbm_to_vmem [thread:$0]  (!%p1764_p5), %s1818_s8, 1024, %s1816_s7, %s2079_s1, %s2073_s17, %s2073_s17, %s2072_s25  }
  0x61   : > { %p1276_p4 = pnand %p1275_p0, %p2080_p3  ;;  %s359_s16 = scalar_lea.hbm %s2045_s4, %s1665_s30 }
  0x62   : > { %s361_s9 = sshll.u32 %s359_s16, 4  ;;  %s356_s18 = scalar_lea.vmem [#allocation10], %s1757_s14  ;;  %s362_s9 = int_to_ptr.hbm [resolvable:$true] %s361_s9 }
  0x63   : > { %s363_s21 = sshll.u32 %s356_s18, 4  ;;  %s1527_s10 = sshra.s32 %s362_s9, 4  ;;  %s364_s21 = int_to_ptr.vmem [resolvable:$true] %s363_s21  ;;  %s1528_s10 = int_to_ptr.hbm [resolvable:$true] %s1527_s10 }
  0x64   : > { %1278 = dma.hbm_to_vmem [thread:$0]  (!%p1276_p4), %s277_s22, 128, %s279_s24, [#allocation3], %s2073_s17, %s2073_s17, %s2072_s25  }
  0x65   : > { %s1529_s7 = scalar_lea.hbm %s1528_s10, 1  ;;  %s1534_s0 = scalar_lea.hbm %s2045_s4, 6 }
  0x66   : > { %p1530_p6 = scmp.ne.s32.totalorder %s1528_s10, %s1529_s7  ;;  %p1535_p9 = scmp.lt.s32.totalorder %s1528_s10, %s2045_s4 }
  0x67   : > { %p1536_p11 = scmp.lt.s32.totalorder %s1534_s0, %s1529_s7 }
  0x68   : > { %p1532_p8 = pnand %p1530_p6, %p1777_p7 }
  0x69   : > { %p1537_p1 = por %p1536_p11, %p1535_p9 }
  0x6a   : > { %p1533_p0 = pneg %p1532_p8 }
  0x6c   : > { %p1538_p3 = pnand %p1537_p1, %p1533_p0 }
  0x6e   : > { %1541 = shalt.err (!%p1538_p3)
}
  0x6f   : > { %s2081_s25 = scalar_lea.sflag [#allocation9], %s1754_s13  ;;  %s398_s24 = scalar_lea.hbm %s2047_s6, %s1665_s30 }
  0x70   : > { %1291 = dma.hbm_to_vmem [thread:$0]  (!%p1764_p5), %s362_s9, 16, %s364_s21, %s2081_s25  }
  0x71   : > { %s395_s18 = scalar_lea.vmem [#allocation13], %s1757_s14  ;;  %s400_s1 = sshll.u32 %s398_s24, 4  ;;  %s401_s1 = int_to_ptr.hbm [resolvable:$true] %s400_s1 }
  0x72   : > { %s402_s8 = sshll.u32 %s395_s18, 4  ;;  %s1557_s10 = sshra.s32 %s401_s1, 4  ;;  %s403_s8 = int_to_ptr.vmem [resolvable:$true] %s402_s8  ;;  %s1558_s10 = int_to_ptr.hbm [resolvable:$true] %s1557_s10 }
  0x73   : > { %s1559_s7 = scalar_lea.hbm %s1558_s10, 1  ;;  %s1564_s9 = scalar_lea.hbm %s2047_s6, 6 }
  0x74   : > { %p1560_p4 = scmp.ne.s32.totalorder %s1558_s10, %s1559_s7  ;;  %p1565_p0 = scmp.lt.s32.totalorder %s1558_s10, %s2047_s6 }
  0x75   : > { %p1566_p9 = scmp.lt.s32.totalorder %s1564_s9, %s1559_s7 }
  0x76   : > { %p1562_p6 = pnand %p1560_p4, %p1777_p7 }
  0x77   : > { %p1567_p11 = por %p1566_p9, %p1565_p0 }
  0x78   : > { %p1563_p8 = pneg %p1562_p6 }
  0x7a   : > { %p1568_p1 = pnand %p1567_p11, %p1563_p8 }
  0x7c   : > { %1571 = shalt.err (!%p1568_p1)
}
  0x7d   : > { %s2082_s14 = scalar_lea.sflag [#allocation12], %s1754_s13  ;;  %417 = sbr.rel (%p1869_p2) target bundleno = 1592 (0x638), region = 52 }
  0x7e   : > { %1297 = dma.hbm_to_vmem [thread:$0]  (!%p1764_p5), %s401_s1, 16, %s403_s8, %s2082_s14  }
  0x7f   : > { %p2083_p7 = scmp.eq.s32.totalorder (!%p1869_p2), %s1840_s26, 0 }
  0x82   : > { %1632 = dma.done.wait (%p2083_p7), [#allocation3], 128   ;;  %p2084_p3 = pmov %p2083_p7 }
  0x83   : > { %s424_s15 = sand.u32 1, %s1840_s26   ;;  %s1943_s25 = sand.u32 1, %s1657_s28  }
  0x84   : > { %1634 = vsyncadd (%p2084_p3), [#allocation3], 4294967168  ;;  %s1145_s23 = sshll.u32 %s1943_s25, 3  ;;  %s425_s17 = scalar_lea.sflag [#allocation6], %s424_s15 }
  0x85   : > { %s1946_s13 = scalar_lea.vmem [#allocation5], %s1145_s23 }
  0x86   : > { %1636 = dma.done.wait (%p1849_p10), %s425_s17, 1152  }
  0x87   : > { %1638 = vsyncadd (%p1849_p10), %s425_s17, 4294966144  ;;  %s1146_s12 = sshll.u32 %s1943_s25, 6  ;;  %s445_s24 = scalar_lea.sflag [#allocation9], %s424_s15 }
  0x88   : > { %s438_s22 = scalar_lea.vmem [#allocation7], %s1146_s12  ;;  %s447_s18 = scalar_lea.vmem [#allocation8], %s1943_s25 }
  0x89   : > { %1640 = dma.done.wait (%p1849_p10), %s445_s24, 32  }
  0x8a   : > { %1642 = vsyncadd (%p1849_p10), %s445_s24, 4294967264  ;;  %s456_s8 = scalar_lea.vmem [#allocation10], %s1943_s25  ;;  %s463_s1 = scalar_lea.sflag [#allocation12], %s424_s15 }
  0x8b   : > { %s1959_s10 = scalar_lea.vmem [#allocation11], %s1146_s12 }
  0x8c   : > { %1644 = dma.done.wait (%p1849_p10), %s463_s1, 1040  }
  0x8d   : > { %1646 = vsyncadd (%p1849_p10), %s463_s1, 4294966256  ;;  %v1243_v0 = vld [vmem:[%s438_s22 + $0x38] sm:$0xff]  ;;  %v1242_v1 = vld [vmem:[%s438_s22 + $0x30] sm:$0xff]  ;;  %vm672_vm2 = vcmask 130048   ;;  %s475_s20 = scalar_lea.vmem [#allocation13], %s1943_s25  ;;  %p534_p5 = scmp.lt.s32.totalorder %s1840_s26, 5 }
  0x8e   : > { %618 = vmatpush.bf16.msra.mxu0 %v1243_v0  ;;  %v1241_v2 = vld [vmem:[%s438_s22 + $0x28] sm:$0xff]  ;;  %v1240_v3 = vld [vmem:[%s438_s22 + $0x20] sm:$0xff]  ;;  %v1239_v4 = vld [vmem:[%s438_s22 + $0x18] sm:$0xff]  ;;  %s2089_s9 = sld [smem:[#allocation25_spill]]  ;;  %s1148_s16 = sshll.u32 %s1943_s25, 4 }
  0x8f   : > { %v1238_v5 = vld [vmem:[%s438_s22 + $0x10] sm:$0xff]  ;;  %v1237_v6 = vld [vmem:[%s438_s22 + $0x8] sm:$0xff]  ;;  %v1236_v7 = vld [vmem:[%s438_s22] sm:$0xff]  ;;  %s535_s7 = scalar_select %p534_p5, %s1840_s26, 5 }
  0x90   : > { %v1235_v8 = vld [vmem:[#allocation2] sm:$0xff]  ;;  %v1254_v17 = vld [vmem:[%s1946_s13] sm:$0xff]   ;;  %s1252_s14 = sshll.u32 %s1840_s26, 4  ;;  %s2090_s17 = sld [smem:[#allocation26_spill]] }
  0x91   : > { %v1343_v9 = vld [vmem:[%s447_s18] ss:$0 sm:$0xff]  ;;  %v1255_v20 = vunpack.c.l.bf16 %v1254_v17  ;;  %v1256_v27 = vunpack.c.h.bf16 %v1254_v17  ;;  %v1251_v52 = vld [vmem:[%s1959_s10 + $0x38] sm:$0xff]  ;;  %v1250_v53 = vld [vmem:[%s1959_s10 + $0x30] sm:$0xff]  ;;  %s533_s12 = scalar_lea.vmem [#allocation14], %s1148_s16  ;;  %s927_s26 = scalar_lea.sflag [#allocation4], %s1943_s25 }
  0x92   : > { %619 = vmatpush.bf16.msra.mxu0 %v1242_v1  ;;  %v563_v15 = vld [vmem:[%s456_s8] sm:$0x1]  ;;  %805 = vmatpush.bf16.msra.mxu3 %v1251_v52  ;;  %v1249_v54 = vld [vmem:[%s1959_s10 + $0x28] sm:$0xff]  ;;  %v1247_v56 = vld [vmem:[%s1959_s10 + $0x18] sm:$0xff]  ;;  %s939_s22 = sshll.u32 %s533_s12, 4  ;;  %s940_s22 = int_to_ptr.vmem [resolvable:$true] %s939_s22 }
  0x93   : > { %vm1968_vm0 = vcmp.gt.f32.partialorder %v1255_v20, 0.0  ;;  %vm1975_vm4 = vcmp.gt.f32.partialorder %v1256_v27, 0.0  ;;  %v1248_v55 = vld [vmem:[%s1959_s10 + $0x20] sm:$0xff]  ;;  %v1246_v57 = vld [vmem:[%s1959_s10 + $0x10] sm:$0xff]  ;;  %v1245_v58 = vld [vmem:[%s1959_s10 + $0x8] sm:$0xff] }
  0x94   : > { %v1244_v60 = vld [vmem:[%s1959_s10] sm:$0xff]  ;;  %s536_s21 = scalar_lea.vmem %s2089_s9, %s535_s7 }
  0x96   : > { %620 = vmatpush.bf16.msra.mxu0 %v1241_v2  ;;  %806 = vmatpush.bf16.msra.mxu3 %v1250_v53  ;;  %s938_s13 = scalar_lea.hbm %s2090_s17, %s1252_s14 }
  0x97   : > { %s941_s24 = sshll.u32 %s938_s13, 4  ;;  %s942_s24 = int_to_ptr.hbm [resolvable:$true] %s941_s24 }
  0x98   : > { %s1601_s18 = sshra.s32 %s942_s24, 4  ;;  %s1602_s18 = int_to_ptr.hbm [resolvable:$true] %s1601_s18 }
  0x99   : > { %s1603_s8 = scalar_lea.hbm %s1602_s18, 16  ;;  %p1608_p6 = scmp.lt.s32.totalorder %s1602_s18, %s2090_s17 }
  0x9a   : > { %621 = vmatpush.bf16.msra.mxu0 %v1240_v3  ;;  %807 = vmatpush.bf16.msra.mxu3 %v1249_v54  ;;  %p1604_p10 = scmp.ne.s32.totalorder %s1602_s18, %s1603_s8 }
  0x9c   : > { %p1605_p2 = pnand %p1604_p10, %p1857_p12 }
  0x9e   : > { %622 = vmatpush.bf16.msra.mxu0 %v1239_v4  ;;  %808 = vmatpush.bf16.msra.mxu3 %v1248_v55  ;;  %p1606_p4 = pneg %p1605_p2 }
  0xa2   : > { %623 = vmatpush.bf16.msra.mxu0 %v1238_v5  ;;  %809 = vmatpush.bf16.msra.mxu3 %v1247_v56 }
  0xa6   : > { %624 = vmatpush.bf16.msra.mxu0 %v1237_v6  ;;  %810 = vmatpush.bf16.msra.mxu3 %v1246_v57 }
  0xaa   : > { %625 = vmatpush.bf16.msra.mxu0 %v1236_v7  ;;  %811 = vmatpush.bf16.msra.mxu3 %v1245_v58 }
  0xad   : > { %626 = vmatmul.bf16.vlgmr.msra.gmra.mxu0 %v1235_v8 }
  0xae   : > { %812 = vmatpush.bf16.msra.mxu3 %v1244_v60 }
 0x12a   : > { %v627_v10 = vpop.f32.mrf.mxu0 }
 0x12b   : > { %v635_v11 = vmul.f32 %v1343_v9, %v627_v10 }
 0x12d   : > { %637 = vadd.xlane.f32.xlu0 %v635_v11 }
 0x132   : > { %v629_v12 = vpop.f32.mrf.mxu0 }
 0x133   : > { %655 = vmatpush.xpose.msra.mxu1 %v629_v12  ;;  %v696_v13 = vpack.c.bf16 %v629_v12, %v627_v10  ;;  %v636_v14 = vmul.f32 %v1343_v9, %v629_v12 }
 0x135   : > { %707 = vmatpush.bf16.msra.mxu2 %v696_v13  ;;  %639 = vadd.xlane.f32.xlu0 %v636_v14 }
 0x137   : > { %656 = vmatpush.xpose.msra.mxu1 %v627_v10 }
 0x13a   : > { %657 = vmatmul.f32.vlgmr.msra.gmra.mxu1 %v563_v15 }
 0x1a0   : > { %v638_v16 = vpop.xlane.xlu0 %637 }
 0x1a8   : > { %v640_v21 = vpop.xlane.xlu0 %639 }
 0x1b7   : > { %v658_v18 = vpop.f32.mrf.mxu1 }
 0x1b8   : > { %v661_v19 = vperm.slane %v658_v18, 0 }
 0x1ba   : > { %v662_v22 = vadd.f32 %v661_v19, %v638_v16  ;;  %v663_v23 = vadd.f32 %v661_v19, %v640_v21  ;;  %v1344_v19 = vld [vmem:[%s475_s20] ss:$0 sm:$0xff]  ;;  %s1607_s20 = scalar_lea.hbm %s2090_s17, 96 }
 0x1bb   : > { %p1609_p8 = scmp.lt.s32.totalorder %s1607_s20, %s1603_s8 }
 0x1bc   : > { %vm664_vm1 = vcmp.gt.f32.partialorder %v662_v22, 0.0  ;;  %v666_v25 = vmul.f32 0.2, %v662_v22  ;;  %v667_v28 = vmul.f32 0.2, %v663_v23  ;;  %vm665_vm3 = vcmp.gt.f32.partialorder %v663_v23, 0.0 }
 0x1bd   : > { %p1610_p0 = por %p1609_p8, %p1608_p6 }
 0x1be   : > { %v668_v26 = vsel %vm664_vm1, %v662_v22, %v666_v25  ;;  %v669_v32 = vsel %vm665_vm3, %v663_v23, %v667_v28 }
 0x1bf   : > { %v670_v29 = vsel %vm1968_vm0, %v668_v26, -9e+15  ;;  %v671_v33 = vsel %vm1975_vm4, %v669_v32, -9e+15  ;;  %v756_v26 = vld [vmem:[%s536_s21] sm:$0x1]  ;;  %p1611_p9 = pnand %p1610_p0, %p1606_p4 }
 0x1c0   : > { %v673_v30 = vsel %vm672_vm2, %v670_v29, -inf  ;;  %v676_v34 = vsel %vm672_vm2, %v671_v33, -inf }
 0x1c1   : > { %674 = vmax.xlane.f32.xlu1 %v673_v30 }
 0x1c9   : > { %677 = vmax.xlane.f32.xlu1 %v676_v34 }
 0x234   : > { %v675_v35 = vpop.xlane.xlu1 %674 }
 0x235   : > { %v679_v36 = vsub.f32 %v670_v29, %v675_v35 }
 0x237   : > { %v681_v37 = vmul.f32 1.442695, %v679_v36 }
 0x239   : > { %1345 = vpow2.f32 %v681_v37 }
 0x23c   : > { %v678_v38 = vpop.xlane.xlu1 %677 }
 0x23d   : > { %v680_v39 = vsub.f32 %v671_v33, %v678_v38 }
 0x23f   : > { %v1346_v40 = vpop.eup %1345  ;;  %v683_v41 = vmul.f32 1.442695, %v680_v39 }
 0x240   : > { %v685_v42 = vsel %vm672_vm2, %v1346_v40, 0.0 }
 0x241   : > { %1347 = vpow2.f32 %v683_v41  ;;  %686 = vadd.xlane.f32.xlu2 %v685_v42 }
 0x247   : > { %v1348_v43 = vpop.eup %1347 }
 0x248   : > { %v688_v44 = vsel %vm672_vm2, %v1348_v43, 0.0 }
 0x249   : > { %689 = vadd.xlane.f32.xlu2 %v688_v44 }
 0x2b4   : > { %v687_v45 = vpop.xlane.xlu2 %686 }
 0x2b5   : > { %1349 = vrcp.f32 %v687_v45 }
 0x2bb   : > { %v1350_v47 = vpop.eup %1349 }
 0x2bc   : > { %v690_v46 = vpop.xlane.xlu2 %689  ;;  %v693_v49 = vmul.f32 %v1350_v47, %v1346_v40 }
 0x2bd   : > { %1351 = vrcp.f32 %v690_v46 }
 0x2c3   : > { %v1352_v48 = vpop.eup %1351 }
 0x2c4   : > { %v694_v50 = vmul.f32 %v1352_v48, %v1348_v43 }
 0x2c6   : > { %v695_v51 = vpack.c.bf16 %v694_v50, %v693_v49 }
 0x2c8   : > { %1185 = vmatmul.msk.bf16.vlgmr.msra.gmra.mxu2 %vm672_vm2, %v695_v51 }
 0x34b   : > { %v709_v59 = vpop.f32.mrf.mxu2 }
 0x34c   : > { %v716_v61 = vmin.f32 %v709_v59, 0.0  ;;  %vm714_vm5 = vcmp.gt.f32.partialorder %v709_v59, 0.0 }
 0x34e   : > { %v718_v62 = vmul.f32 1.442695, %v716_v61 }
 0x350   : > { %1353 = vpow2.f32 %v718_v62 }
 0x353   : > { %v711_v63 = vpop.f32.mrf.mxu2 }
 0x354   : > { %v717_v0 = vmin.f32 %v711_v63, 0.0  ;;  %vm715_vm6 = vcmp.gt.f32.partialorder %v711_v63, 0.0 }
 0x356   : > { %v1354_v1 = vpop.eup %1353  ;;  %v720_v2 = vmul.f32 1.442695, %v717_v0 }
 0x357   : > { %v1186_v3 = vadd.f32 -1.0, %v1354_v1 }
 0x358   : > { %1355 = vpow2.f32 %v720_v2 }
 0x359   : > { %v724_v4 = vsel %vm714_vm5, %v709_v59, %v1186_v3 }
 0x35a   : > { %v728_v5 = vmin.f32 %v724_v4, 0.0  ;;  %vm726_vm7 = vcmp.gt.f32.partialorder %v724_v4, 0.0 }
 0x35c   : > { %v730_v7 = vmul.f32 1.442695, %v728_v5 }
 0x35e   : > { %v1356_v6 = vpop.eup %1355  ;;  %1357 = vpow2.f32 %v730_v7 }
 0x35f   : > { %v1187_v8 = vadd.f32 -1.0, %v1356_v6 }
 0x361   : > { %v725_v9 = vsel %vm715_vm6, %v711_v63, %v1187_v8 }
 0x362   : > { %v729_v10 = vmin.f32 %v725_v9, 0.0  ;;  %vm727_vm8 = vcmp.gt.f32.partialorder %v725_v9, 0.0 }
 0x364   : > { %v732_v11 = vmul.f32 1.442695, %v729_v10  ;;  %v1358_v12 = vpop.eup %1357 }
 0x365   : > { %v1188_v13 = vadd.f32 -1.0, %v1358_v12 }
 0x366   : > { %1359 = vpow2.f32 %v732_v11 }
 0x367   : > { %v736_v16 = vsel %vm726_vm7, %v724_v4, %v1188_v13 }
 0x36c   : > { %v1360_v14 = vpop.eup %1359 }
 0x36d   : > { %v1189_v15 = vadd.f32 -1.0, %v1360_v14 }
 0x36f   : > { %v737_v17 = vsel %vm727_vm8, %v725_v9, %v1189_v15 }
 0x370   : > { %v738_v18 = vpack.c.bf16 %v737_v17, %v736_v16 }
 0x372   : > { %813 = vmatmul.bf16.vlgmr.msra.gmra.mxu3 %v738_v18 }
 0x3f5   : > { %v814_v20 = vpop.f32.mrf.mxu3 }
 0x3f6   : > { %v822_v21 = vmul.f32 %v1344_v19, %v814_v20 }
 0x3f8   : > { %824 = vadd.xlane.f32.xlu0 %v822_v21 }
 0x3fd   : > { %v816_v22 = vpop.f32.mrf.mxu3 }
 0x3fe   : > { %842 = vmatpush.xpose.msrb.mxu1 %v816_v22  ;;  %v882_v23 = vpack.c.bf16 %v816_v22, %v814_v20  ;;  %v823_v25 = vmul.f32 %v1344_v19, %v816_v22 }
 0x400   : > { %893 = vmatpush.bf16.msrb.mxu2 %v882_v23  ;;  %826 = vadd.xlane.f32.xlu1 %v823_v25 }
 0x402   : > { %843 = vmatpush.xpose.msrb.mxu1 %v814_v20 }
 0x405   : > { %844 = vmatmul.f32.vlgmr.msrb.gmra.mxu1 %v756_v26 }
 0x46b   : > { %v825_v29 = vpop.xlane.xlu0 %824 }
 0x473   : > { %v827_v30 = vpop.xlane.xlu1 %826 }
 0x482   : > { %v845_v27 = vpop.f32.mrf.mxu1 }
 0x483   : > { %v848_v28 = vperm.slane %v845_v27, 0 }
 0x485   : > { %v849_v32 = vadd.f32 %v848_v28, %v825_v29  ;;  %v850_v33 = vadd.f32 %v848_v28, %v827_v30 }
 0x487   : > { %v853_v34 = vmul.f32 0.2, %v849_v32  ;;  %v854_v35 = vmul.f32 0.2, %v850_v33  ;;  %vm851_vm9 = vcmp.gt.f32.partialorder %v849_v32, 0.0  ;;  %vm852_vm10 = vcmp.gt.f32.partialorder %v850_v33, 0.0 }
 0x489   : > { %v855_v36 = vsel %vm851_vm9, %v849_v32, %v853_v34  ;;  %v856_v37 = vsel %vm852_vm10, %v850_v33, %v854_v35 }
 0x48a   : > { %v857_v38 = vsel %vm1968_vm0, %v855_v36, -9e+15  ;;  %v858_v39 = vsel %vm1975_vm4, %v856_v37, -9e+15 }
 0x48b   : > { %v859_v40 = vsel %vm672_vm2, %v857_v38, -inf  ;;  %v862_v41 = vsel %vm672_vm2, %v858_v39, -inf }
 0x48c   : > { %860 = vmax.xlane.f32.xlu2 %v859_v40  ;;  %863 = vmax.xlane.f32.xlu0 %v862_v41 }
 0x4ff   : > { %v861_v42 = vpop.xlane.xlu2 %860  ;;  %v864_v43 = vpop.xlane.xlu0 %863 }
 0x500   : > { %v865_v44 = vsub.f32 %v857_v38, %v861_v42  ;;  %v866_v45 = vsub.f32 %v858_v39, %v864_v43 }
 0x502   : > { %v867_v46 = vmul.f32 1.442695, %v865_v44  ;;  %v869_v47 = vmul.f32 1.442695, %v866_v45 }
 0x504   : > { %1361 = vpow2.f32 %v867_v46 }
 0x505   : > { %1363 = vpow2.f32 %v869_v47 }
 0x50a   : > { %v1362_v48 = vpop.eup %1361 }
 0x50b   : > { %v1364_v24 = vpop.eup %1363  ;;  %v871_v49 = vsel %vm672_vm2, %v1362_v48, 0.0 }
 0x50c   : > { %872 = vadd.xlane.f32.xlu1 %v871_v49  ;;  %v874_v31 = vsel %vm672_vm2, %v1364_v24, 0.0 }
 0x50d   : > { %875 = vadd.xlane.f32.xlu2 %v874_v31 }
 0x57f   : > { %v873_v50 = vpop.xlane.xlu1 %872 }
 0x580   : > { %v876_v51 = vpop.xlane.xlu2 %875  ;;  %1365 = vrcp.f32 %v873_v50 }
 0x581   : > { %1367 = vrcp.f32 %v876_v51 }
 0x586   : > { %v1366_v52 = vpop.eup %1365 }
 0x587   : > { %v1368_v53 = vpop.eup %1367  ;;  %v879_v54 = vmul.f32 %v1366_v52, %v1362_v48 }
 0x588   : > { %v880_v55 = vmul.f32 %v1368_v53, %v1364_v24 }
 0x58a   : > { %v881_v56 = vpack.c.bf16 %v880_v55, %v879_v54 }
 0x58c   : > { %1222 = vmatmul.msk.bf16.vlgmr.msrb.gmra.mxu2 %vm672_vm2, %v881_v56 }
 0x60f   : > { %v895_v57 = vpop.f32.mrf.mxu2 }
 0x610   : > { %v902_v58 = vmin.f32 %v895_v57, 0.0  ;;  %vm900_vm11 = vcmp.gt.f32.partialorder %v895_v57, 0.0 }
 0x612   : > { %v904_v59 = vmul.f32 1.442695, %v902_v58 }
 0x614   : > { %1369 = vpow2.f32 %v904_v59 }
 0x617   : > { %v897_v60 = vpop.f32.mrf.mxu2 }
 0x618   : > { %v903_v61 = vmin.f32 %v897_v60, 0.0  ;;  %vm901_vm12 = vcmp.gt.f32.partialorder %v897_v60, 0.0 }
 0x61a   : > { %v1370_v62 = vpop.eup %1369  ;;  %v906_v63 = vmul.f32 1.442695, %v903_v61 }
 0x61b   : > { %v1223_v0 = vadd.f32 -1.0, %v1370_v62 }
 0x61c   : > { %1371 = vpow2.f32 %v906_v63 }
 0x61d   : > { %v910_v1 = vsel %vm900_vm11, %v895_v57, %v1223_v0 }
 0x61e   : > { %v914_v2 = vmin.f32 %v910_v1, 0.0  ;;  %vm912_vm13 = vcmp.gt.f32.partialorder %v910_v1, 0.0 }
 0x620   : > { %v916_v3 = vmul.f32 1.442695, %v914_v2 }
 0x622   : > { %v1372_v4 = vpop.eup %1371  ;;  %1373 = vpow2.f32 %v916_v3 }
 0x623   : > { %v1224_v5 = vadd.f32 -1.0, %v1372_v4 }
 0x625   : > { %v911_v6 = vsel %vm901_vm12, %v897_v60, %v1224_v5 }
 0x626   : > { %v915_v7 = vmin.f32 %v911_v6, 0.0  ;;  %vm913_vm14 = vcmp.gt.f32.partialorder %v911_v6, 0.0 }
 0x628   : > { %v1374_v8 = vpop.eup %1373  ;;  %v918_v9 = vmul.f32 1.442695, %v915_v7 }
 0x629   : > { %v1225_v10 = vadd.f32 -1.0, %v1374_v8 }
 0x62a   : > { %1375 = vpow2.f32 %v918_v9 }
 0x62b   : > { %v922_v11 = vsel %vm912_vm13, %v910_v1, %v1225_v10 }
 0x62c   : > { %924 = vst [vmem:[%s533_s12] sm:$0xff] %v922_v11 }
 0x630   : > { %v1376_v12 = vpop.eup %1375 }
 0x631   : > { %v1226_v13 = vadd.f32 -1.0, %v1376_v12 }
 0x633   : > { %v923_v14 = vsel %vm913_vm14, %v911_v6, %v1226_v13 }
 0x634   : > { %925 = vst [vmem:[%s533_s12 + $0x8] sm:$0xff] %v923_v14 }
 0x635   : > { %1614 = shalt.err (!%p1611_p9)
}
 0x636   : > { %s1670_s25 = smov 128   ;;  %s1671_s3 = smov 8  }
 0x637   : > { %1273 = dma.vmem_to_hbm [thread:$0]  (%p1857_p12), %s940_s22, 256, %s942_s24, %s927_s26, %s1670_s25, %s1670_s25, %s1671_s3  }
 0x638 PF: > { %p1305_p11 = scmp.ge.s32.totalorder %s1665_s30, 2  ;;  %s956_s9 = sand.u32 1, %s1653_s27  }
 0x639   : > { %s957_s21 = scalar_lea.sflag [#allocation4], %s956_s9 }
 0x63a   : > { %p1299_p1 = pnand %p1305_p11, %p1861_p13 }
 0x63c   : > { %p1300_p7 = pneg %p1299_p1 }
 0x63e   : > { %1648 = dma.done.wait (%p1300_p7), %s957_s21, 256  }
 0x63f   : > { %1650 = vsyncadd (%p1300_p7), %s957_s21, 4294967040  ;;  %s2091_s30 = sld [smem:[#allocation20_spill]]  ;;  %s2093_s27 = smov %s1657_s28 }
 0x640   : > { %s2092_s16 = sld [smem:[#allocation21_spill]]  ;;  %s2094_s28 = smov %s1661_s29 }
 0x645   : > { %p28_p3 = scmp.ge.s32.totalorder %s2091_s30, 8  }
 0x646   : > { %s2095_s29 = smov %s2092_s16 }
 0x647   :  { %30 = sbr.rel (!%p28_p3) target bundleno = 16 (0x10), region = 164 }
 0x64c   :  { %963 = vsyncpa [#allocation3], 1 }
 0x64d   :  { %965 = vsyncpa [#allocation3 + $0x1], 1 }
 0x64e   :  { %966 = vsyncpa [#allocation6], 1 }
 0x64f   :  { %968 = vsyncpa [#allocation6 + $0x1], 1 }
 0x650   :  { %969 = vsyncpa [#allocation9], 1 }
 0x651   :  { %971 = vsyncpa [#allocation9 + $0x1], 1 }
 0x652   :  { %972 = vsyncpa [#allocation12], 1 }
 0x653   :  { %974 = vsyncpa [#allocation12 + $0x1], 1 }
 0x654   :  { %975 = vsyncpa [#allocation4], 1 }
 0x655   :  { %977 = vsyncpa [#allocation4 + $0x1], 1 }

</bundles_post_ra>
